<compile_context>
chip_gen: v7x
topology: tpu7x:2x2x1
jax: 0.10.0
libtpu: 0.0.40
codegen_flags: <defaults>
</compile_context>

<pallas_src>
import jax
import jax.numpy as jnp
import numpy as np
from jax.experimental import pallas as pl
from jax.experimental.pallas import tpu as pltpu


def _fused_attn_kernel(xq_ref, xk_ref, xv_ref, mask_ref,
                       wq_ref, wk_ref, wv_ref, wo_ref, bo_ref, o_ref):
    """One batch row: QKV projections, masked softmax, PV, fc_out — all head-batched."""
    _, H, Lq, D = xq_ref.shape
    Lk = xk_ref.shape[2]
    mxu = wq_ref.dtype                    # MXU operand dtype (pre-cast in wrapper)

    # Shared per-head projections: one (H*L, D) @ (D, D) MXU call each.
    # 1/sqrt(embed_size) is pre-folded into wq, f32 accumulation.
    q = jnp.dot(xq_ref[0].reshape(H * Lq, D), wq_ref[...],
                preferred_element_type=jnp.float32).reshape(H, Lq, D)
    k = jnp.dot(xk_ref[0].reshape(H * Lk, D), wk_ref[...],
                preferred_element_type=jnp.float32).reshape(H, Lk, D)
    v = jnp.dot(xv_ref[0].reshape(H * Lk, D), wv_ref[...],
                preferred_element_type=jnp.float32).reshape(H, Lk, D)

    # Additive mask bias, computed once and broadcast over heads (single add).
    bias = jnp.where(mask_ref[0] == 0, jnp.float32(-1e20), jnp.float32(0.0))

    # Head-batched energy: (H, Lq, Lk).
    s = jnp.einsum("hqd,hkd->hqk", q.astype(mxu), k.astype(mxu),
                   preferred_element_type=jnp.float32)
    s = s + bias[None, :, :]

    # Max-subtracted softmax in f32; denominator reciprocal on the EUP slot.
    s = s - jnp.max(s, axis=-1, keepdims=True)
    p = jnp.exp(s)
    attn = p * pl.reciprocal(jnp.sum(p, axis=-1, keepdims=True), approx=True)

    # Head-batched PV: (H, Lq, D).
    ctx = jnp.einsum("hqk,hkd->hqd", attn.astype(mxu), v.astype(mxu),
                     preferred_element_type=jnp.float32)

    # Fused fc_out against per-head (D, E) slabs of W_out.T, then a cheap
    # cross-vreg sum over heads — no (H,Lq,D)->(Lq,E) relayout, scatter or concat.
    y = jnp.einsum("hqd,hde->hqe", ctx.astype(mxu), wo_ref[...],
                   preferred_element_type=jnp.float32)
    y = jnp.sum(y, axis=0) + bo_ref[...]
    o_ref[0] = y.astype(o_ref.dtype)


def self_attention_forward(values, keys, query, mask, params, heads,
                           *, mxu_dtype=jnp.float32):
    """Forward pass matching the PyTorch SelfAttention module."""
    N, q_len, E = query.shape
    k_len = keys.shape[1]
    v_len = values.shape[1]
    D = E // heads
    assert D * heads == E, "Embed size needs to be divided by heads"
    assert k_len == v_len

    # Layout plumbing (outside the kernel): split heads, make them the leading
    # batched dim, and pre-cast MXU operands (bf16 on v6e/v7x also halves DMA).
    def split_heads(x):
        n, l, _ = x.shape
        return x.reshape(n, l, heads, D).transpose(0, 2, 1, 3).astype(mxu_dtype)

    xq = split_heads(query)               # (N, H, Lq, D)
    xk = split_heads(keys)                # (N, H, Lk, D)
    xv = split_heads(values)              # (N, H, Lv, D)

    # torch Linear computes x @ W.T; fold the 1/sqrt(embed_size) scale into wq
    # in f32 BEFORE any cast.  fc_out weight is pre-split into per-head slabs.
    scale = np.float32(1.0 / np.sqrt(E))
    wq = (params["wq"].T * scale).astype(mxu_dtype)            # (D, D)
    wk = params["wk"].T.astype(mxu_dtype)                      # (D, D)
    wv = params["wv"].T.astype(mxu_dtype)                      # (D, D)
    wo = params["w_fc"].T.reshape(heads, D, E).astype(mxu_dtype)  # (H, D, E)
    b_fc = params["b_fc"].reshape(1, E).astype(jnp.float32)    # (1, E), f32 add
    mask = mask.astype(jnp.int32)

    return pl.pallas_call(
        _fused_attn_kernel,
        out_shape=jax.ShapeDtypeStruct((N, q_len, E), query.dtype),
        grid_spec=pltpu.PrefetchScalarGridSpec(
            num_scalar_prefetch=0,
            grid=(N,),                                          # even, parallel -> v7x 2 TCs
            in_specs=[
                pl.BlockSpec((1, heads, q_len, D), lambda b: (b, 0, 0, 0)),
                pl.BlockSpec((1, heads, k_len, D), lambda b: (b, 0, 0, 0)),
                pl.BlockSpec((1, heads, v_len, D), lambda b: (b, 0, 0, 0)),
                pl.BlockSpec((1, q_len, k_len), lambda b: (b, 0, 0)),
                # Grid-invariant weights (constant index_map => DMA'd once).
                # TODO(synk): single-buffer these (pl.Buffered(1)) when E is scaled up on v7x.
                pl.BlockSpec((D, D), lambda b: (0, 0)),
                pl.BlockSpec((D, D), lambda b: (0, 0)),
                pl.BlockSpec((D, D), lambda b: (0, 0)),
                pl.BlockSpec((heads, D, E), lambda b: (0, 0, 0)),
                pl.BlockSpec((1, E), lambda b: (0, 0)),
            ],
            out_specs=pl.BlockSpec((1, q_len, E), lambda b: (b, 0, 0)),
        ),
        compiler_params=pltpu.CompilerParams(
            dimension_semantics=("parallel",),
            vmem_limit_bytes=32 * 1024 * 1024),
    )(xq, xk, xv, mask, wq, wk, wv, wo, b_fc)


def reference_forward(values, keys, query, mask, params, heads):
    """Pure-JAX reference mirroring the PyTorch forward semantics."""
    N, q_len, E = query.shape
    D = E // heads
    vh = values.reshape(N, -1, heads, D) @ params["wv"].T
    kh = keys.reshape(N, -1, heads, D) @ params["wk"].T
    qh = query.reshape(N, -1, heads, D) @ params["wq"].T
    energy = jnp.einsum("nqhd,nkhd->nhqk", qh, kh)
    energy = jnp.where(mask[:, None, :, :] == 0, jnp.float32(-1e20), energy)
    attn = jax.nn.softmax(energy / jnp.sqrt(jnp.float32(E)), axis=3)
    out = jnp.einsum("nhqk,nkhd->nqhd", attn, vh).reshape(N, q_len, E)
    return out @ params["w_fc"].T + params["b_fc"]


if __name__ == "__main__":
    N, L, E, H = 2, 8, 32, 4       # batch, seq, embed_size, heads
    D = E // H                     # head_dim

    root = jax.random.PRNGKey(0)
    ks = jax.random.split(root, 8)

    # deterministic parameter init (PyTorch Linear default: U(-1/sqrt(fan_in), +))
    bh = 1.0 / np.sqrt(D)
    be = 1.0 / np.sqrt(E)
    params = {
        "wq": jax.random.uniform(ks[0], (D, D), jnp.float32, -bh, bh),
        "wk": jax.random.uniform(ks[1], (D, D), jnp.float32, -bh, bh),
        "wv": jax.random.uniform(ks[2], (D, D), jnp.float32, -bh, bh),
        "w_fc": jax.random.uniform(ks[3], (E, E), jnp.float32, -be, be),
        "b_fc": jax.random.uniform(ks[4], (E,), jnp.float32, -be, be),
    }

    values = jax.random.normal(ks[5], (N, L, E), jnp.float32)
    keys = jax.random.normal(ks[6], (N, L, E), jnp.float32)
    query = jax.random.normal(ks[7], (N, L, E), jnp.float32)
    # causal mask, 0 == masked (matches masked_fill(mask == 0, -1e20))
    mask = jnp.broadcast_to(jnp.tril(jnp.ones((L, L), jnp.int32)), (N, L, L))

    ref = reference_forward(values, keys, query, mask, params, H)

    # f32 MXU operands: tight check against the f32 reference.
    out = self_attention_forward(values, keys, query, mask, params, H)
    jax.block_until_ready(out)
    np.testing.assert_allclose(np.asarray(out), np.asarray(ref),
                               rtol=5e-3, atol=5e-3)

    # bf16 MXU operands (the v6e/v7x-targeted configuration): loose check.
    out_bf16 = self_attention_forward(values, keys, query, mask, params, H,
                                      mxu_dtype=jnp.bfloat16)
    jax.block_until_ready(out_bf16)
    np.testing.assert_allclose(np.asarray(out_bf16), np.asarray(ref),
                               rtol=1e-1, atol=1e-1)

    print("KERNEL_OK")
</pallas_src>

<mosaic_0001>
module attributes {stable_mosaic.version = 11 : i64} {
  func.func @_fused_attn_kernel(%arg0: i32, %arg1: memref<1x4x8x8xf32, #tpu.memory_space<vmem>>, %arg2: memref<1x4x8x8xf32, #tpu.memory_space<vmem>>, %arg3: memref<1x4x8x8xf32, #tpu.memory_space<vmem>>, %arg4: memref<1x8x8xi32, #tpu.memory_space<vmem>>, %arg5: memref<8x8xf32, #tpu.memory_space<vmem>>, %arg6: memref<8x8xf32, #tpu.memory_space<vmem>>, %arg7: memref<8x8xf32, #tpu.memory_space<vmem>>, %arg8: memref<4x8x32xf32, #tpu.memory_space<vmem>>, %arg9: memref<1x32xf32, #tpu.memory_space<vmem>>, %arg10: memref<1x8x32xf32, #tpu.memory_space<vmem>>) attributes {dimension_semantics = [#tpu.dimension_semantics<parallel>], iteration_bounds = array<i64: 2>, scalar_prefetch = 0 : i64, scratch_operands = 0 : i64, tpu.core_type = #tpu.core_type<tc>, window_params = [{transform_indices = @transform_0, window_bounds = array<i64: 1, 4, 8, 8>}, {transform_indices = @transform_1, window_bounds = array<i64: 1, 4, 8, 8>}, {transform_indices = @transform_2, window_bounds = array<i64: 1, 4, 8, 8>}, {transform_indices = @transform_3, window_bounds = array<i64: 1, 8, 8>}, {pipeline_mode = #tpu.pipeline_mode<synchronous>, transform_indices = @transform_4, window_bounds = array<i64: 8, 8>}, {pipeline_mode = #tpu.pipeline_mode<synchronous>, transform_indices = @transform_5, window_bounds = array<i64: 8, 8>}, {pipeline_mode = #tpu.pipeline_mode<synchronous>, transform_indices = @transform_6, window_bounds = array<i64: 8, 8>}, {pipeline_mode = #tpu.pipeline_mode<synchronous>, transform_indices = @transform_7, window_bounds = array<i64: 4, 8, 32>}, {pipeline_mode = #tpu.pipeline_mode<synchronous>, transform_indices = @transform_8, window_bounds = array<i64: 1, 32>}, {transform_indices = @transform_9, window_bounds = array<i64: 1, 8, 32>}]} {
    %c0 = arith.constant 0 : index
    %c0_0 = arith.constant 0 : index
    %c0_1 = arith.constant 0 : index
    %c0_2 = arith.constant 0 : index
    %0 = vector.load %arg1[%c0, %c0_0, %c0_1, %c0_2] : memref<1x4x8x8xf32, #tpu.memory_space<vmem>>, vector<1x4x8x8xf32>
    %1 = vector.shape_cast %0 : vector<1x4x8x8xf32> to vector<4x8x8xf32>
    %2 = vector.shape_cast %1 : vector<4x8x8xf32> to vector<32x8xf32>
    %c0_3 = arith.constant 0 : index
    %c0_4 = arith.constant 0 : index
    %3 = vector.load %arg5[%c0_3, %c0_4] : memref<8x8xf32, #tpu.memory_space<vmem>>, vector<8x8xf32>
    %cst = arith.constant dense<0.000000e+00> : vector<32x8xf32>
    %4 = tpu.matmul %2, %3, %cst {dimension_numbers = #tpu.dot_dimension_numbers<[1], [0], [0], [1], [0, 0, 1, 1], [], []>} : vector<32x8xf32>, vector<8x8xf32>, vector<32x8xf32> -> vector<32x8xf32>
    %5 = vector.shape_cast %4 : vector<32x8xf32> to vector<4x8x8xf32>
    %c0_5 = arith.constant 0 : index
    %c0_6 = arith.constant 0 : index
    %c0_7 = arith.constant 0 : index
    %c0_8 = arith.constant 0 : index
    %6 = vector.load %arg2[%c0_5, %c0_6, %c0_7, %c0_8] : memref<1x4x8x8xf32, #tpu.memory_space<vmem>>, vector<1x4x8x8xf32>
    %7 = vector.shape_cast %6 : vector<1x4x8x8xf32> to vector<4x8x8xf32>
    %8 = vector.shape_cast %7 : vector<4x8x8xf32> to vector<32x8xf32>
    %c0_9 = arith.constant 0 : index
    %c0_10 = arith.constant 0 : index
    %9 = vector.load %arg6[%c0_9, %c0_10] : memref<8x8xf32, #tpu.memory_space<vmem>>, vector<8x8xf32>
    %cst_11 = arith.constant dense<0.000000e+00> : vector<32x8xf32>
    %10 = tpu.matmul %8, %9, %cst_11 {dimension_numbers = #tpu.dot_dimension_numbers<[1], [0], [0], [1], [0, 0, 1, 1], [], []>} : vector<32x8xf32>, vector<8x8xf32>, vector<32x8xf32> -> vector<32x8xf32>
    %11 = vector.shape_cast %10 : vector<32x8xf32> to vector<4x8x8xf32>
    %c0_12 = arith.constant 0 : index
    %c0_13 = arith.constant 0 : index
    %c0_14 = arith.constant 0 : index
    %c0_15 = arith.constant 0 : index
    %12 = vector.load %arg3[%c0_12, %c0_13, %c0_14, %c0_15] : memref<1x4x8x8xf32, #tpu.memory_space<vmem>>, vector<1x4x8x8xf32>
    %13 = vector.shape_cast %12 : vector<1x4x8x8xf32> to vector<4x8x8xf32>
    %14 = vector.shape_cast %13 : vector<4x8x8xf32> to vector<32x8xf32>
    %c0_16 = arith.constant 0 : index
    %c0_17 = arith.constant 0 : index
    %15 = vector.load %arg7[%c0_16, %c0_17] : memref<8x8xf32, #tpu.memory_space<vmem>>, vector<8x8xf32>
    %cst_18 = arith.constant dense<0.000000e+00> : vector<32x8xf32>
    %16 = tpu.matmul %14, %15, %cst_18 {dimension_numbers = #tpu.dot_dimension_numbers<[1], [0], [0], [1], [0, 0, 1, 1], [], []>} : vector<32x8xf32>, vector<8x8xf32>, vector<32x8xf32> -> vector<32x8xf32>
    %17 = vector.shape_cast %16 : vector<32x8xf32> to vector<4x8x8xf32>
    %c0_19 = arith.constant 0 : index
    %c0_20 = arith.constant 0 : index
    %c0_21 = arith.constant 0 : index
    %18 = vector.load %arg4[%c0_19, %c0_20, %c0_21] : memref<1x8x8xi32, #tpu.memory_space<vmem>>, vector<1x8x8xi32>
    %19 = vector.shape_cast %18 : vector<1x8x8xi32> to vector<8x8xi32>
    %c0_i32 = arith.constant 0 : i32
    %20 = vector.broadcast %c0_i32 : i32 to vector<8x8xi32>
    %21 = arith.cmpi eq, %19, %20 : vector<8x8xi32>
    %cst_22 = arith.constant -1.000000e+20 : f32
    %cst_23 = arith.constant 0.000000e+00 : f32
    %22 = vector.broadcast %cst_22 : f32 to vector<8x8xf32>
    %23 = vector.broadcast %cst_23 : f32 to vector<8x8xf32>
    %24 = arith.select %21, %22, %23 : vector<8x8xi1>, vector<8x8xf32>
    "tpu.trace_start"() <{level = 10 : i32, message = "hqd,hkd->hqk"}> : () -> ()
    %cst_24 = arith.constant dense<0.000000e+00> : vector<4x8x8xf32>
    %25 = tpu.matmul %5, %11, %cst_24 {dimension_numbers = #tpu.dot_dimension_numbers<[2], [2], [1], [1], [0, 0, 0, 1, 1, 1], [0], [0]>} : vector<4x8x8xf32>, vector<4x8x8xf32>, vector<4x8x8xf32> -> vector<4x8x8xf32>
    "tpu.trace_stop"() : () -> ()
    %26 = vector.shape_cast %24 : vector<8x8xf32> to vector<1x8x8xf32>
    %27 = vector.broadcast %26 : vector<1x8x8xf32> to vector<4x8x8xf32>
    %28 = arith.addf %25, %27 : vector<4x8x8xf32>
    %cst_25 = arith.constant dense<0xFF800000> : vector<4x8xf32>
    %29 = vector.multi_reduction <maximumf>, %28, %cst_25 [2] : vector<4x8x8xf32> to vector<4x8xf32>
    %30 = vector.shape_cast %29 : vector<4x8xf32> to vector<4x8x1xf32>
    %31 = vector.broadcast %30 : vector<4x8x1xf32> to vector<4x8x8xf32>
    %32 = arith.subf %28, %31 : vector<4x8x8xf32>
    %33 = math.exp %32 : vector<4x8x8xf32>
    %cst_26 = arith.constant dense<0.000000e+00> : vector<4x8xf32>
    %34 = vector.multi_reduction <add>, %33, %cst_26 [2] : vector<4x8x8xf32> to vector<4x8xf32>
    %35 = vector.shape_cast %34 : vector<4x8xf32> to vector<4x8x1xf32>
    %36 = tpu.reciprocal %35 {approx = true} : vector<4x8x1xf32> -> vector<4x8x1xf32>
    %37 = vector.broadcast %36 : vector<4x8x1xf32> to vector<4x8x8xf32>
    %38 = arith.mulf %33, %37 : vector<4x8x8xf32>
    "tpu.trace_start"() <{level = 10 : i32, message = "hqk,hkd->hqd"}> : () -> ()
    %cst_27 = arith.constant dense<0.000000e+00> : vector<4x8x8xf32>
    %39 = tpu.matmul %38, %17, %cst_27 {dimension_numbers = #tpu.dot_dimension_numbers<[2], [1], [1], [2], [0, 0, 0, 1, 1, 2], [0], [0]>} : vector<4x8x8xf32>, vector<4x8x8xf32>, vector<4x8x8xf32> -> vector<4x8x8xf32>
    "tpu.trace_stop"() : () -> ()
    %c0_28 = arith.constant 0 : index
    %c0_29 = arith.constant 0 : index
    %c0_30 = arith.constant 0 : index
    %40 = vector.load %arg8[%c0_28, %c0_29, %c0_30] : memref<4x8x32xf32, #tpu.memory_space<vmem>>, vector<4x8x32xf32>
    "tpu.trace_start"() <{level = 10 : i32, message = "hqd,hde->hqe"}> : () -> ()
    %cst_31 = arith.constant dense<0.000000e+00> : vector<4x8x32xf32>
    %41 = tpu.matmul %39, %40, %cst_31 {dimension_numbers = #tpu.dot_dimension_numbers<[2], [1], [1], [2], [0, 0, 0, 1, 1, 2], [0], [0]>} : vector<4x8x8xf32>, vector<4x8x32xf32>, vector<4x8x32xf32> -> vector<4x8x32xf32>
    "tpu.trace_stop"() : () -> ()
    %cst_32 = arith.constant dense<0.000000e+00> : vector<8x32xf32>
    %42 = vector.multi_reduction <add>, %41, %cst_32 [0] : vector<4x8x32xf32> to vector<8x32xf32>
    %c0_33 = arith.constant 0 : index
    %c0_34 = arith.constant 0 : index
    %43 = vector.load %arg9[%c0_33, %c0_34] : memref<1x32xf32, #tpu.memory_space<vmem>>, vector<1x32xf32>
    %44 = vector.broadcast %43 : vector<1x32xf32> to vector<8x32xf32>
    %45 = arith.addf %42, %44 : vector<8x32xf32>
    %c0_35 = arith.constant 0 : index
    %c0_36 = arith.constant 0 : index
    %c0_37 = arith.constant 0 : index
    %46 = vector.load %arg10[%c0_35, %c0_36, %c0_37] : memref<1x8x32xf32, #tpu.memory_space<vmem>>, vector<1x8x32xf32>
    %47 = vector.shape_cast %46 : vector<1x8x32xf32> to vector<8x32xf32>
    %48 = vector.shape_cast %45 : vector<8x32xf32> to vector<1x8x32xf32>
    tpu.vector_store %arg10[%c0_35, %c0_36, %c0_37], %48 {strides = array<i32>} : memref<1x8x32xf32, #tpu.memory_space<vmem>>, vector<1x8x32xf32>,
    return
  }
  func.func @transform_0(%arg0: i32) -> (i32, i32, i32, i32) {
    %c0_i32 = arith.constant 0 : i32
    %c0_i32_0 = arith.constant 0 : i32
    %c0_i32_1 = arith.constant 0 : i32
    %c0_i32_2 = arith.constant 0 : i32
    return %arg0, %c0_i32, %c0_i32_0, %c0_i32_1 : i32, i32, i32, i32
  }
  func.func @transform_1(%arg0: i32) -> (i32, i32, i32, i32) {
    %c0_i32 = arith.constant 0 : i32
    %c0_i32_0 = arith.constant 0 : i32
    %c0_i32_1 = arith.constant 0 : i32
    %c0_i32_2 = arith.constant 0 : i32
    return %arg0, %c0_i32, %c0_i32_0, %c0_i32_1 : i32, i32, i32, i32
  }
  func.func @transform_2(%arg0: i32) -> (i32, i32, i32, i32) {
    %c0_i32 = arith.constant 0 : i32
    %c0_i32_0 = arith.constant 0 : i32
    %c0_i32_1 = arith.constant 0 : i32
    %c0_i32_2 = arith.constant 0 : i32
    return %arg0, %c0_i32, %c0_i32_0, %c0_i32_1 : i32, i32, i32, i32
  }
  func.func @transform_3(%arg0: i32) -> (i32, i32, i32) {
    %c0_i32 = arith.constant 0 : i32
    %c0_i32_0 = arith.constant 0 : i32
    %c0_i32_1 = arith.constant 0 : i32
    return %arg0, %c0_i32, %c0_i32_0 : i32, i32, i32
  }
  func.func @transform_4(%arg0: i32) -> (i32, i32) {
    %c0_i32 = arith.constant 0 : i32
    %c0_i32_0 = arith.constant 0 : i32
    %c0_i32_1 = arith.constant 0 : i32
    return %c0_i32, %c0_i32_0 : i32, i32
  }
  func.func @transform_5(%arg0: i32) -> (i32, i32) {
    %c0_i32 = arith.constant 0 : i32
    %c0_i32_0 = arith.constant 0 : i32
    %c0_i32_1 = arith.constant 0 : i32
    return %c0_i32, %c0_i32_0 : i32, i32
  }
  func.func @transform_6(%arg0: i32) -> (i32, i32) {
    %c0_i32 = arith.constant 0 : i32
    %c0_i32_0 = arith.constant 0 : i32
    %c0_i32_1 = arith.constant 0 : i32
    return %c0_i32, %c0_i32_0 : i32, i32
  }
  func.func @transform_7(%arg0: i32) -> (i32, i32, i32) {
    %c0_i32 = arith.constant 0 : i32
    %c0_i32_0 = arith.constant 0 : i32
    %c0_i32_1 = arith.constant 0 : i32
    %c0_i32_2 = arith.constant 0 : i32
    return %c0_i32, %c0_i32_0, %c0_i32_1 : i32, i32, i32
  }
  func.func @transform_8(%arg0: i32) -> (i32, i32) {
    %c0_i32 = arith.constant 0 : i32
    %c0_i32_0 = arith.constant 0 : i32
    %c0_i32_1 = arith.constant 0 : i32
    return %c0_i32, %c0_i32_0 : i32, i32
  }
  func.func @transform_9(%arg0: i32) -> (i32, i32, i32) {
    %c0_i32 = arith.constant 0 : i32
    %c0_i32_0 = arith.constant 0 : i32
    %c0_i32_1 = arith.constant 0 : i32
    return %arg0, %c0_i32, %c0_i32_0 : i32, i32, i32
  }
}

</mosaic_0001>

<bundles_post_ra>
// kernel: tpu_custom_call.1
= control target key start
LH: loop header
LB: loop body
LE: loop exit
PB: predicated region body
PF: predicated region fallthrough
CT: control target
= control target key end

     0   :  { %s3000_s0 = inlined_call_operand.hbm [shape: f32[2,4,8,8], index: 0, kind: input, shape index: {}]   ;;  %s3001_s1 = inlined_call_operand.hbm [shape: f32[2,4,8,8], index: 1, kind: input, shape index: {}]   ;;  %s3002_s2 = inlined_call_operand.hbm [shape: f32[2,4,8,8], index: 2, kind: input, shape index: {}]   ;;  %s3003_s3 = inlined_call_operand.hbm [shape: s32[2,8,8], index: 3, kind: input, shape index: {}]   ;;  %s3004_s4 = inlined_call_operand.vmem [shape: f32[8,8], index: 4, kind: input, shape index: {}]   ;;  %s3005_s5 = inlined_call_operand.vmem [shape: f32[8,8], index: 5, kind: input, shape index: {}]   ;;  %s3006_s6 = inlined_call_operand.hbm [shape: f32[8,8], index: 6, kind: input, shape index: {}]   ;;  %s3007_s7 = inlined_call_operand.hbm [shape: f32[4,8,32], index: 7, kind: input, shape index: {}]   ;;  %s3008_s8 = inlined_call_operand.vmem [shape: f32[1,32], index: 8, kind: input, shape index: {}]   ;;  %s3009_s9 = inlined_call_operand.hbm [shape: f32[2,8,32], index: 9, kind: output, shape index: {}]  }
   0x1   :  { %3031 = sst [smem:[#allocation26_spill]] %s3001_s1 }
   0x2   :  { %3032 = sst [smem:[#allocation27_spill]] %s3006_s6 }
   0x3   :  { %3033 = sst [smem:[#allocation28_spill]] %s3008_s8 }
   0x4   :  { %3034 = sst [smem:[#allocation29_spill]] %s3009_s9 }
   0x5   :  { %14 = vsyncpa [#allocation3], 0 }
   0x6   :  { %16 = vsyncpa [#allocation3 + $0x1], 0 }
   0x7   :  { %17 = vsyncpa [#allocation6], 0 }
   0x8   :  { %19 = vsyncpa [#allocation6 + $0x1], 0 }
   0x9   :  { %20 = vsyncpa [#allocation9], 0 }
   0xa   :  { %22 = vsyncpa [#allocation9 + $0x1], 0 }
   0xb   :  { %23 = vsyncpa [#allocation12], 0 }
   0xc   :  { %24 = vsyncpa [#allocation4], 0 }
   0xd   :  { %26 = vsyncpa [#allocation4 + $0x1], 0  ;;  %s2530_s30 = smov 0   ;;  %s2532_s10 = smov 0  }
   0xe   :  { %s2534_s11 = smov 0   ;;  %s2536_s12 = smov 0  }
   0xf LB: > { %3035 = sst [smem:[#allocation20_spill]] %s2455_s30  ;;  %s2551_s13 = sadd.s32 4294967295, %s2467_s12   ;;  %s2467_s12 = sphi %s2536_s12, %s3074_s12   ;;  %s2463_s11 = sphi %s2534_s11, %s3076_s11   ;;  %s2459_s10 = sphi %s2532_s10, %s3078_s10   ;;  %s2455_s30 = sphi %s2530_s30, %s3077_s30  }
  0x10   : > { %3036 = sst [smem:[#allocation21_spill]] %s2463_s11  ;;  %s1924_s14 = sadd.s32 4294967294, %s2467_s12  }
  0x11   : > { %s2555_s15 = sadd.s32 1, %s2467_s12   ;;  %s39_s16 = sadd.s32 1, %s2463_s11 }
  0x12   : > { %3037 = sst [smem:[#allocation22_spill]] %s2555_s15  ;;  %s36_s17 = ssub.s32 %s2467_s12, %s2555_s15 }
  0x13   : > { %p46_p0 = scmp.ne.s32.totalorder %s2463_s11, %s2459_s10  ;;  %p37_p1 = scmp.eq.s32.totalorder %s36_s17, 0 }
  0x14   : > { %p47_p2 = scmp.eq.s32.totalorder %s2467_s12, 0  ;;  %p52_p3 = scmp.ne.s32.totalorder %s2459_s10, %s2455_s30 }
  0x15   : > { %p3010_p4 = scmp.eq.s32.totalorder %s2551_s13, 0  ;;  %p259_p7 = scmp.eq.s32.totalorder %s2551_s13, 1 }
  0x16   : > { %s2567_s18 = scalar_select %p37_p1, %s2463_s11, %s39_s16  }
  0x17   : > { %p2569_p5 = por %p47_p2, %p46_p0  ;;  %p2575_p6 = por %p3010_p4, %p52_p3 }
  0x18   : > { %3038 = sst [smem:[#allocation23_spill]] %s2567_s18  ;;  %p265_p8 = scmp.eq.s32.totalorder %s1924_s14, 1 }
  0x19   : > { %s3040_s20 = scalar_select %p2575_p6, 1, 0 }
  0x1a   : > { %p1925_p9 = scmp.ge.s32.totalorder %s2467_s12, 1  ;;  %p272_p10 = scmp.lt.s32.totalorder %s2467_s12, 3 }
  0x1b   : > { %p2582_p11 = por %p259_p7, %p46_p0  ;;  %p2586_p12 = por %p265_p8, %p52_p3 }
  0x1c   : > { %p2590_p13 = pnand %p1925_p9, %p272_p10  ;;  %s2469_s24 = smov [#allocation10]  }
  0x1d   : > { %s3041_s21 = scalar_select %p2582_p11, 1, 0 }
  0x1e   : > { %s3043_s22 = scalar_select %p2586_p12, 1, 0 }
  0x1f   : > { %3042 = sst [smem:[#allocation24_spill]] %s3041_s21  ;;  %p2125_p2 = pneg %p2590_p13 }
  0x20   : > { %3044 = sst [smem:[#allocation25_spill]] %s3043_s22  ;;  %s291_s25 = sshll.u32 %s2469_s24, 4  ;;  %s292_s25 = int_to_ptr.vmem [resolvable:$true] %s291_s25 }
  0x21   : > { %s3045_s23 = scalar_select %p2590_p13, 1, 0 }
  0x22   : > { %p2151_p4 = scmp.lt.s32.totalorder %s2467_s12, 2  ;;  %p3046_p0 = scmp.eq.s32.totalorder %s2551_s13, 0 }
  0x23   : > { %s2611_s28 = sand.u32 1, %s2463_s11   ;;  %s3049_s6 = sld [smem:[#allocation27_spill]] }
  0x24   : > { %p2600_p7 = pnand %p2125_p2, %p3046_p0  ;;  %p2606_p3 = pnand %p2151_p4, %p2569_p5 }
  0x26   : > { %s3047_s26 = scalar_select %p2600_p7, 1, 0 }
  0x27   : > { %s3048_s27 = scalar_select %p2606_p3, 1, 0 }
  0x28   : > { %p3021_p9 = pneg %p2600_p7 }
  0x29   : > { %s2209_s16 = scalar_lea.hbm %s3049_s6, 128 }
  0x2a   : > { %p2210_p8 = scmp.ne.s32.totalorder %s3049_s6, %s2209_s16  ;;  %p2216_p4 = scmp.lt.u32.totalorder %s2209_s16, %s3049_s6 }
  0x2c   : > { %p2212_p10 = pnand %p3021_p9, %p2210_p8 }
  0x2e   : > { %p2213_p2 = pneg %p2212_p10 }
  0x30   : > { %p2218_p5 = pnand %p2216_p4, %p2213_p2 }
  0x32   : > { %2221 = shalt.err (!%p2218_p5)
}
  0x33   : > { %s2222_s11 = scalar_lea.vmem %s292_s25, 128  ;;  %p2230_p11 = scmp.lt.s32.totalorder %s292_s25, %s292_s25 }
  0x34   : > { %p2223_p0 = scmp.ne.s32.totalorder %s292_s25, %s2222_s11  ;;  %p2231_p6 = scmp.lt.s32.totalorder %s2222_s11, %s2222_s11 }
  0x36   : > { %p2225_p1 = pnand %p2223_p0, %p3021_p9  ;;  %p2232_p13 = por %p2231_p6, %p2230_p11 }
  0x38   : > { %p2226_p12 = pneg %p2225_p1 }
  0x3a   : > { %p2233_p3 = pnand %p2232_p13, %p2226_p12 }
  0x3c   : > { %2236 = shalt.err (!%p2233_p3)
}
  0x3d   : > { %2128 = dma.hbm_to_vmem [thread:$0]  (!%p2600_p7), %s3049_s6, 128, %s292_s25, [#allocation9]  }
  0x3e   : > { %s2636_s18 = sshll.u32 %s2611_s28, 5  ;;  %s2639_s16 = sshll.u32 %s2467_s12, 9 }
  0x3f   : > { %s3020_s11 = sand.u32 1, %s2467_s12   ;;  %s3050_s1 = sld [smem:[#allocation26_spill]] }
  0x40   : > { %s343_s29 = scalar_lea.vmem [#allocation5], %s2636_s18  ;;  %s2653_s25 = scalar_lea.sflag [#allocation6], %s3020_s11 }
  0x41   : > { %s350_s14 = sshll.u32 %s343_s29, 4  ;;  %p3051_p11 = scmp.ne.s32.totalorder %s3048_s27, 0  ;;  %s2649_s14 = int_to_ptr.vmem [resolvable:$true] %s350_s14 }
  0x43   : > { %p2659_p12 = pneg %p3051_p11 }
  0x45   : > { %s2646_s19 = scalar_lea.hbm %s3050_s1, %s2639_s16  ;;  %s2242_s29 = scalar_lea.hbm %s3050_s1, 1024 }
  0x46   : > { %s2237_s6 = scalar_lea.hbm %s2646_s19, 512  ;;  %p2243_p3 = scmp.lt.u32.totalorder %s2646_s19, %s3050_s1 }
  0x47   : > { %p2238_p6 = scmp.ne.s32.totalorder %s2646_s19, %s2237_s6  ;;  %p2244_p8 = scmp.lt.u32.totalorder %s2242_s29, %s2237_s6 }
  0x48   : > { %s3052_s15 = scalar_select %p2659_p12, 1, 0 }
  0x49   : > { %p2240_p13 = pnand %p2659_p12, %p2238_p6  ;;  %p2245_p10 = por %p2244_p8, %p2243_p3 }
  0x4a   : > { %p2246_p2 = scmp.lt.u32.totalorder %s2237_s6, %s2646_s19 }
  0x4b   : > { %p2241_p1 = pneg %p2240_p13 }
  0x4c   : > { %p2247_p4 = por %p2246_p2, %p2245_p10 }
  0x4e   : > { %p2248_p5 = pnand %p2247_p4, %p2241_p1 }
  0x50   : > { %2251 = shalt.err (!%p2248_p5)
}
  0x51   : > { %s2252_s11 = scalar_lea.vmem %s2649_s14, 512  ;;  %s2470_s17 = smov [#allocation5]  }
  0x52   : > { %p2253_p0 = scmp.ne.s32.totalorder %s2649_s14, %s2252_s11  ;;  %s2257_s24 = sshll.u32 %s2470_s17, 4  ;;  %s2258_s24 = int_to_ptr.vmem [resolvable:$false] %s2257_s24 }
  0x53   : > { %s2259_s30 = scalar_lea.vmem %s2258_s24, 1024  ;;  %p2260_p9 = scmp.lt.s32.totalorder %s2649_s14, %s2258_s24 }
  0x54   : > { %p2255_p6 = pnand %p2253_p0, %p2659_p12  ;;  %p2261_p7 = scmp.lt.s32.totalorder %s2259_s30, %s2252_s11 }
  0x56   : > { %p2256_p13 = pneg %p2255_p6  ;;  %p2262_p3 = por %p2261_p7, %p2260_p9 }
  0x58   : > { %p2263_p8 = pnand %p2262_p3, %p2256_p13 }
  0x5a   : > { %2266 = shalt.err (!%p2263_p8)
}
  0x5b   : > { %s2471_s6 = smov 128   ;;  %s2472_s22 = smov 8  }
  0x5c   : > { %2138 = dma.hbm_to_vmem [thread:$0]  (!%p3051_p11), %s2646_s19, 512, %s2649_s14, %s2653_s25, %s2471_s6, %s2471_s6, %s2472_s22  }
  0x5d   : > { %s2473_s29 = smov [#allocation11]   ;;  %s2267_s30 = scalar_lea.hbm %s3007_s7, 512 }
  0x5e   : > { %s301_s17 = sshll.u32 %s2473_s29, 4  ;;  %p2268_p7 = scmp.ne.s32.totalorder %s3007_s7, %s2267_s30  ;;  %s302_s17 = int_to_ptr.vmem [resolvable:$true] %s301_s17 }
  0x5f   : > { %p3053_p9 = scmp.ne.s32.totalorder %s3047_s26, 0  ;;  %p2274_p4 = scmp.lt.u32.totalorder %s2267_s30, %s3007_s7 }
  0x61   : > { %p3054_p1 = pneg %p3053_p9 }
  0x63   : > { %p2270_p10 = pnand %p2268_p7, %p3054_p1 }
  0x65   : > { %p2271_p2 = pneg %p2270_p10 }
  0x67   : > { %p2276_p5 = pnand %p2274_p4, %p2271_p2 }
  0x69   : > { %2279 = shalt.err (!%p2276_p5)
}
  0x6a   : > { %s2280_s19 = scalar_lea.vmem %s302_s17, 512  ;;  %p3055_p6 = pmov %p3054_p1 }
  0x6b   : > { %p2281_p0 = scmp.ne.s32.totalorder %s302_s17, %s2280_s19  ;;  %p2288_p8 = scmp.lt.s32.totalorder %s302_s17, %s302_s17 }
  0x6c   : > { %p2289_p11 = scmp.lt.s32.totalorder %s2280_s19, %s2280_s19 }
  0x6d   : > { %p2283_p13 = pnand %p2281_p0, %p3055_p6 }
  0x6e   : > { %p2290_p12 = por %p2289_p11, %p2288_p8 }
  0x6f   : > { %p2284_p3 = pneg %p2283_p13 }
  0x71   : > { %p2291_p1 = pnand %p2290_p12, %p2284_p3 }
  0x73   : > { %2294 = shalt.err (!%p2291_p1)
}
  0x74   : > { %2131 = dma.hbm_to_vmem [thread:$0]  (!%p3053_p9), %s3007_s7, 512, %s302_s17, [#allocation12], %s2471_s6, %s2471_s6, %s2472_s22  }
  0x75   : > { %s2713_s14 = scalar_lea.hbm %s3000_s0, %s2639_s16  ;;  %s322_s26 = scalar_lea.vmem [#allocation2], %s2636_s18 }
  0x76   : > { %s329_s29 = sshll.u32 %s322_s26, 4  ;;  %s319_s24 = scalar_lea.sflag [#allocation3], %s2611_s28  ;;  %s2716_s29 = int_to_ptr.vmem [resolvable:$true] %s329_s29 }
  0x77   : > { %s2295_s11 = scalar_lea.hbm %s2713_s14, 512  ;;  %p3056_p12 = scmp.ne.s32.totalorder %s3052_s15, 0 }
  0x78   : > { %p2296_p11 = scmp.ne.s32.totalorder %s2713_s14, %s2295_s11  ;;  %s2300_s19 = scalar_lea.hbm %s3000_s0, 1024 }
  0x79   : > { %p2301_p9 = scmp.lt.u32.totalorder %s2713_s14, %s3000_s0  ;;  %p2302_p2 = scmp.lt.u32.totalorder %s2300_s19, %s2295_s11 }
  0x7a   : > { %p2298_p7 = pnand %p2296_p11, %p3056_p12  ;;  %p2304_p5 = scmp.lt.u32.totalorder %s2295_s11, %s2713_s14 }
  0x7b   : > { %p2303_p4 = por %p2302_p2, %p2301_p9 }
  0x7c   : > { %p2299_p10 = pneg %p2298_p7 }
  0x7d   : > { %p2305_p0 = por %p2304_p5, %p2303_p4 }
  0x7f   : > { %p2306_p6 = pnand %p2305_p0, %p2299_p10 }
  0x81   : > { %2309 = shalt.err (!%p2306_p6)
}
  0x82   : > { %s2310_s9 = scalar_lea.vmem %s2716_s29, 512  ;;  %s2474_s21 = smov [#allocation2]  }
  0x83   : > { %p2311_p13 = scmp.ne.s32.totalorder %s2716_s29, %s2310_s9  ;;  %s2315_s26 = sshll.u32 %s2474_s21, 4  ;;  %s2316_s26 = int_to_ptr.vmem [resolvable:$false] %s2315_s26 }
  0x84   : > { %s2317_s17 = scalar_lea.vmem %s2316_s26, 1024  ;;  %p2318_p1 = scmp.lt.s32.totalorder %s2716_s29, %s2316_s26 }
  0x85   : > { %p2313_p3 = pnand %p2311_p13, %p3056_p12  ;;  %p2319_p11 = scmp.lt.s32.totalorder %s2317_s17, %s2310_s9 }
  0x87   : > { %p2314_p8 = pneg %p2313_p3  ;;  %p2320_p7 = por %p2319_p11, %p2318_p1 }
  0x89   : > { %p2321_p9 = pnand %p2320_p7, %p2314_p8 }
  0x8b   : > { %2324 = shalt.err (!%p2321_p9)
}
  0x8c   : > { %p3057_p10 = scmp.ne.s32.totalorder %s3048_s27, 0  ;;  %s2749_s19 = scalar_lea.hbm %s3002_s2, %s2639_s16 }
  0x8d   : > { %s364_s1 = scalar_lea.vmem [#allocation7], %s2636_s18  ;;  %s2325_s9 = scalar_lea.hbm %s2749_s19, 512 }
  0x8e   : > { %2135 = dma.hbm_to_vmem [thread:$0]  (!%p3057_p10), %s2713_s14, 512, %s2716_s29, %s319_s24, %s2471_s6, %s2471_s6, %s2472_s22  }
  0x8f   : > { %s371_s8 = sshll.u32 %s364_s1, 4  ;;  %p2326_p2 = scmp.ne.s32.totalorder %s2749_s19, %s2325_s9  ;;  %s2752_s8 = int_to_ptr.vmem [resolvable:$true] %s371_s8 }
  0x90   : > { %s2330_s29 = scalar_lea.hbm %s3002_s2, 1024  ;;  %p2331_p0 = scmp.lt.u32.totalorder %s2749_s19, %s3002_s2 }
  0x91   : > { %p2328_p4 = pnand %p2326_p2, %p3056_p12  ;;  %p2332_p6 = scmp.lt.u32.totalorder %s2330_s29, %s2325_s9 }
  0x92   : > { %p2334_p3 = scmp.lt.u32.totalorder %s2325_s9, %s2749_s19 }
  0x93   : > { %p2329_p5 = pneg %p2328_p4  ;;  %p2333_p13 = por %p2332_p6, %p2331_p0 }
  0x95   : > { %p2335_p8 = por %p2334_p3, %p2333_p13 }
  0x97   : > { %p2336_p1 = pnand %p2335_p8, %p2329_p5 }
  0x99   : > { %2339 = shalt.err (!%p2336_p1)
}
  0x9a   : > { %s2340_s18 = scalar_lea.vmem %s2752_s8, 512  ;;  %s2475_s26 = smov [#allocation7]  }
  0x9b   : > { %p2341_p11 = scmp.ne.s32.totalorder %s2752_s8, %s2340_s18  ;;  %s2345_s17 = sshll.u32 %s2475_s26, 4  ;;  %s2346_s17 = int_to_ptr.vmem [resolvable:$false] %s2345_s17 }
  0x9c   : > { %s2347_s11 = scalar_lea.vmem %s2346_s17, 1024  ;;  %p2348_p2 = scmp.lt.s32.totalorder %s2752_s8, %s2346_s17 }
  0x9d   : > { %p2343_p7 = pnand %p2341_p11, %p3056_p12  ;;  %p2349_p4 = scmp.lt.s32.totalorder %s2347_s11, %s2340_s18 }
  0x9f   : > { %p2344_p9 = pneg %p2343_p7  ;;  %p2350_p0 = por %p2349_p4, %p2348_p2 }
  0xa1   : > { %p2351_p6 = pnand %p2350_p0, %p2344_p9 }
  0xa3   : > { %2354 = shalt.err (!%p2351_p6)
}
  0xa4   : > { %2141 = dma.hbm_to_vmem [thread:$0]  (!%p3057_p10), %s2749_s19, 512, %s2752_s8, %s2653_s25, %s2471_s6, %s2471_s6, %s2472_s22  }
  0xa5   : > { %s1938_s30 = sshll.u32 %s2611_s28, 3  ;;  %s1939_s1 = sshll.u32 %s2467_s12, 7 }
  0xa6   : > { %s2784_s14 = scalar_lea.hbm %s3003_s3, %s1939_s1  ;;  %s385_s29 = scalar_lea.vmem [#allocation8], %s1938_s30 }
  0xa7   : > { %s392_s24 = sshll.u32 %s385_s29, 4  ;;  %s3058_s16 = sand.u32 1, %s2467_s12   ;;  %s393_s24 = int_to_ptr.vmem [resolvable:$true] %s392_s24 }
  0xa8   : > { %s382_s18 = scalar_lea.sflag [#allocation9], %s3058_s16  ;;  %s2355_s26 = scalar_lea.hbm %s2784_s14, 128 }
  0xa9   : > { %p2356_p5 = scmp.ne.s32.totalorder %s2784_s14, %s2355_s26  ;;  %s2360_s6 = scalar_lea.hbm %s3003_s3, 256 }
  0xaa   : > { %p2361_p8 = scmp.lt.u32.totalorder %s2784_s14, %s3003_s3  ;;  %p2362_p1 = scmp.lt.u32.totalorder %s2360_s6, %s2355_s26 }
  0xab   : > { %p2358_p13 = pnand %p2356_p5, %p3056_p12  ;;  %p2364_p7 = scmp.lt.u32.totalorder %s2355_s26, %s2784_s14 }
  0xac   : > { %p2363_p11 = por %p2362_p1, %p2361_p8 }
  0xad   : > { %p2359_p3 = pneg %p2358_p13 }
  0xae   : > { %p2365_p9 = por %p2364_p7, %p2363_p11 }
  0xb0   : > { %p2366_p2 = pnand %p2365_p9, %p2359_p3 }
  0xb2   : > { %2369 = shalt.err (!%p2366_p2)
}
  0xb3   : > { %s2370_s8 = scalar_lea.vmem %s393_s24, 128  ;;  %s2476_s17 = smov [#allocation8]  }
  0xb4   : > { %p2371_p4 = scmp.ne.s32.totalorder %s393_s24, %s2370_s8  ;;  %s2375_s11 = sshll.u32 %s2476_s17, 4  ;;  %s2376_s11 = int_to_ptr.vmem [resolvable:$false] %s2375_s11 }
  0xb5   : > { %s2377_s30 = scalar_lea.vmem %s2376_s11, 256  ;;  %p2378_p5 = scmp.lt.s32.totalorder %s393_s24, %s2376_s11 }
  0xb6   : > { %p2373_p0 = pnand %p2371_p4, %p3056_p12  ;;  %p2379_p13 = scmp.lt.s32.totalorder %s2377_s30, %s2370_s8 }
  0xb8   : > { %p2374_p6 = pneg %p2373_p0  ;;  %p2380_p10 = por %p2379_p13, %p2378_p5 }
  0xba   : > { %p2381_p1 = pnand %p2380_p10, %p2374_p6 }
  0xbc   : > { %2384 = shalt.err (!%p2381_p1)
}
  0xbd   : > { %p3059_p8 = scmp.ne.s32.totalorder %s3048_s27, 0  ;;  %p3060_p3 = scmp.ne.s32.totalorder %s3045_s23, 0 }
  0xbe   : > { %s2808_s15 = sand.u32 (!%p3060_p3), 1, %s2459_s10   ;;  %p3061_p12 = scmp.ne.s32.totalorder (!%p3060_p3), %s3040_s20, 0 }
  0xbf   : > { %2144 = dma.hbm_to_vmem [thread:$0]  (!%p3059_p8), %s2784_s14, 128, %s393_s24, %s382_s18  }
  0xc0   : > { %401 = sbr.rel (%p3060_p3) target bundleno = 1410 (0x582), region = 56  ;;  %s1941_s1 = sshll.u32 (!%p3060_p3), %s2808_s15, 5 }
  0xc1   : > { %s404_s9 = scalar_lea.sflag (!%p3060_p3), [#allocation3], %s2808_s15  ;;  %s2812_s21 = scalar_lea.vmem (!%p3060_p3), [#allocation2], %s1941_s1 }
  0xc7   : > { %2430 = dma.done.wait (%p3061_p12), %s404_s9, 512  }
  0xc8   : > { %2432 = vsyncadd (%p3061_p12), %s404_s9, 4294966784  ;;  %s412_s27 = sand.u32 1, %s2551_s13   ;;  %s2819_s14 = scalar_lea.vmem [#allocation5], %s1941_s1 }
  0xc9   : > { %s413_s23 = scalar_lea.sflag [#allocation6], %s412_s27 }
  0xca   : > { %2434 = dma.done.wait (%p3061_p12), %s413_s23, 1024  }
  0xcb   : > { %2436 = vsyncadd (%p3061_p12), %s413_s23, 4294966272  ;;  %s1944_s29 = sshll.u32 %s2808_s15, 3  ;;  %s2826_s24 = scalar_lea.vmem [#allocation7], %s1941_s1 }
  0xcc   : > { %s431_s16 = scalar_lea.sflag [#allocation9], %s412_s27  ;;  %s2830_s18 = scalar_lea.vmem [#allocation8], %s1944_s29 }
  0xcd   : > { %2438 = dma.done.wait (%p3061_p12), %s431_s16, 128  }
  0xce   : > { %2440 = vsyncadd (%p3061_p12), %s431_s16, 4294967168  ;;  %p3062_p10 = scmp.eq.s32.totalorder %s2551_s13, 0 }
  0xd0   : > { %2442 = dma.done.wait (%p3062_p10), [#allocation9], 128   ;;  %p3063_p11 = pmov %p3062_p10 }
  0xd1   : > { %p3064_p7 = pmov %p3062_p10 }
  0xd2   : > { %2444 = vsyncadd (%p3063_p11), [#allocation9], 4294967168 }
  0xd3   : > { %2446 = dma.done.wait (%p3064_p7), [#allocation12], 512   ;;  %p3065_p9 = pmov %p3064_p7 }
  0xd4   : > { %vm497_vm0 = vcmask 64512   ;;  %v599_v0 = vld [vmem:[%s3005_s5] sm:$0xff]  ;;  %v596_v2 = vld [vmem:[%s2819_s14 + $0x8] sm:$0xff]  ;;  %v597_v6 = vld [vmem:[%s2819_s14 + $0x10] sm:$0xff]  ;;  %v2477_v13 = vmov 0.0   ;;  %vm2478_vm1 = vmmov 0  }
  0xd5   : > { %2448 = vsyncadd (%p3065_p9), [#allocation12], 4294966784  ;;  %v595_v1 = vld [vmem:[%s2819_s14] sm:$0xff]  ;;  %2031 = vmatprep.subr.mxu1 %v599_v0  ;;  %v493_v5 = vld [vmem:[%s2812_s21 + $0x8] sm:$0xff]  ;;  %vm1738_vm3 = vcmask 261120   ;;  %s3066_s6 = sld [smem:[#allocation24_spill]] }
  0xd6   : > { %2033 = vmatprep.mubr.msk.f32.mxu1 %vm497_vm0, %v595_v1  ;;  %v496_v3 = vld [vmem:[%s3004_s4] sm:$0xff]  ;;  %2032 = vmatpush3.msra.mxu1 %v599_v0  ;;  %v494_v7 = vld [vmem:[%s2812_s21 + $0x10] sm:$0xff]  ;;  %v598_v9 = vld [vmem:[%s2819_s14 + $0x18] sm:$0xff]  ;;  %s3067_s8 = sld [smem:[#allocation28_spill]]  ;;  %s1978_s17 = sshll.u32 %s2551_s13, 7 }
  0xd7   : > { %v492_v4 = vld [vmem:[%s2812_s21] sm:$0xff]  ;;  %2023 = vmatprep.subr.mxu0 %v496_v3  ;;  %2034 = vmatmul.mubr.msk.f32.vlgmr.msra.gmra.mrb[0].mxu1 %vm497_vm0, %v596_v2  ;;  %v701_v8 = vld [vmem:[#allocation10] sm:$0xff]  ;;  %v495_v10 = vld [vmem:[%s2812_s21 + $0x18] sm:$0xff]  ;;  %s491_s11 = scalar_lea.vmem [#allocation13], %s1944_s29  ;;  %s3068_s21 = sld [smem:[#allocation29_spill]] }
  0xd8   : > { %2024 = vmatpush3.msra.mxu0 %v496_v3  ;;  %2025 = vmatprep.mubr.msk.f32.mxu0 %vm497_vm0, %v492_v4  ;;  %v697_v11 = vld [vmem:[%s2826_s24] sm:$0xff]  ;;  %v698_v12 = vld [vmem:[%s2826_s24 + $0x8] sm:$0xff]  ;;  %v699_v14 = vld [vmem:[%s2826_s24 + $0x10] sm:$0xff]  ;;  %s1769_s30 = sshll.u32 %s491_s11, 4  ;;  %s1756_s23 = scalar_lea.sflag [#allocation4], %s2808_s15  ;;  %s2957_s30 = int_to_ptr.vmem [resolvable:$true] %s1769_s30 }
  0xd9   : > { %2036 = vmatprep.mubr.msk.f32.mxu1 %vm497_vm0, %v597_v6  ;;  %2026 = vmatmul.mubr.msk.f32.vlgmr.msra.gmra.mrb[0].mxu0 %vm497_vm0, %v493_v5  ;;  %v700_v15 = vld [vmem:[%s2826_s24 + $0x18] sm:$0xff]  ;;  %v799_v28 = vld [vmem:[%s2830_s18] sm:$0xff]  ;;  %s2385_s14 = scalar_lea.vmem %s2957_s30, 128  ;;  %s2479_s13 = smov [#allocation13]  }
  0xda   : > { %2039 = vmatprep.subr.mxu0 %v701_v8  ;;  %2028 = vmatprep.mubr.msk.f32.mxu0 %vm497_vm0, %v494_v7  ;;  %vm800_vm2 = vcmp.eq.s32.totalorder %v799_v28, 0  ;;  %p2386_p2 = scmp.ne.s32.totalorder %s2957_s30, %s2385_s14  ;;  %s2389_s29 = sshll.u32 %s2479_s13, 4  ;;  %s2390_s29 = int_to_ptr.vmem [resolvable:$false] %s2389_s29 }
  0xdb   : > { %2040 = vmatpush3.msra.mxu0 %v701_v8  ;;  %2037 = vmatmul.mubr.msk.f32.gmra.mrb[2].mxu1 %vm497_vm0, %v598_v9  ;;  %v801_v29 = vsel %vm800_vm2, -1e+20, %v2477_v13  ;;  %p3069_p4 = scmp.ne.s32.totalorder %s3066_s6, 0  ;;  %s2391_s24 = scalar_lea.vmem %s2390_s29, 256 }
  0xdc   : > { %2047 = vmatprep.subr.mxu1 %v2477_v13  ;;  %2057 = vmatprep.subr.mxu0 %v2477_v13  ;;  %p2392_p5 = scmp.lt.s32.totalorder %s2957_s30, %s2390_s29  ;;  %p2393_p13 = scmp.lt.s32.totalorder %s2391_s24, %s2385_s14 }
  0xdd   : > { %2029 = vmatmul.mubr.msk.f32.gmra.mrb[2].mxu0 %vm497_vm0, %v495_v10  ;;  %2049 = vmatprep.mubr.msk.f32.mxu1 %vm2478_vm1, %v2477_v13  ;;  %s2955_s27 = scalar_lea.hbm %s3068_s21, %s1978_s17  ;;  %p2387_p0 = pnand %p2386_p2, %p3069_p4 }
  0xde   : > { %2041 = vmatprep.mubr.msk.f32.mxu0 %vm497_vm0, %v697_v11  ;;  %p2394_p1 = por %p2393_p13, %p2392_p5 }
  0xdf   : > { %p2388_p6 = pneg %p2387_p0 }
  0xe1   : > { %2042 = vmatmul.mubr.msk.f32.vlgmr.msra.gmra.mrb[4].mxu0 %vm497_vm0, %v698_v12  ;;  %p2395_p8 = pnand %p2394_p1, %p2388_p6 }
  0xe2   : > { %2044 = vmatprep.mubr.msk.f32.mxu0 %vm497_vm0, %v699_v14 }
  0xe5   : > { %2045 = vmatmul.mubr.msk.f32.gmra.mrb[6].mxu0 %vm497_vm0, %v700_v15  ;;  %v1442_v15 = vld [vmem:[#allocation11] sm:$0xff] }
  0xe6   : > { %2059 = vmatprep.mubr.msk.f32.mxu0 %vm2478_vm1, %v2477_v13 }
 0x1aa   : > { %v2035_v16 = vpop.f32.mrb[0].mxu1 }
 0x1ab   : > { %v678_v17 = vpop.f32.mrb[1].mxu1 }
 0x1ac   : > { %2048 = vmatpush3.xpose.msk.msra.mxu1 %vm497_vm0, %v678_v17  ;;  %v2027_v18 = vpop.f32.mrb[0].mxu0  ;;  %v1444_v17 = vld [vmem:[#allocation11 + $0x10] sm:$0xff] }
 0x1ad   : > { %v576_v19 = vpop.f32.mrb[1].mxu0  ;;  %2052 = vmatprep.subr.mxu1 %v2477_v13 }
 0x1ae   : > { %v2038_v20 = vpop.f32.mrb[2].mxu1 }
 0x1af   : > { %v688_v21 = vpop.f32.mrb[3].mxu1  ;;  %2050 = vmatmul.mubr.msk.f32.vlgmr.msra.gmra.mrb[4].mxu1 %vm497_vm0, %v576_v19 }
 0x1b0   : > { %2053 = vmatpush3.xpose.msk.msra.mxu1 %vm497_vm0, %v2035_v16  ;;  %2058 = vmatpush3.xpose.msk.msra.mxu0 %vm497_vm0, %v688_v21  ;;  %v2030_v22 = vpop.f32.mrb[2].mxu0  ;;  %v1443_v16 = vld [vmem:[#allocation11 + $0x8] sm:$0xff] }
 0x1b1   : > { %v586_v23 = vpop.f32.mrb[3].mxu0  ;;  %2054 = vmatprep.mubr.msk.f32.mxu1 %vm2478_vm1, %v2477_v13  ;;  %2062 = vmatprep.subr.mxu1 %v2477_v13 }
 0x1b2   : > { %2067 = vmatprep.subr.mxu0 %v2477_v13 }
 0x1b3   : > { %2055 = vmatmul.mubr.msk.f32.vlgmr.msra.gmra.mrb[6].mxu1 %vm497_vm0, %v2027_v18  ;;  %2060 = vmatmul.mubr.msk.f32.vlgmr.msra.gmra.mrb[8].mxu0 %vm497_vm0, %v586_v23 }
 0x1b4   : > { %2063 = vmatpush3.xpose.msk.msra.mxu1 %vm497_vm0, %v2038_v20  ;;  %2064 = vmatprep.mubr.msk.f32.mxu1 %vm2478_vm1, %v2477_v13  ;;  %v2043_v24 = vpop.f32.mrb[4].mxu0  ;;  %v1445_v20 = vld [vmem:[#allocation11 + $0x18] sm:$0xff] }
 0x1b5   : > { %2072 = vmatprep.subr.mxu1 %v2477_v13  ;;  %2069 = vmatprep.mubr.msk.f32.mxu0 %vm2478_vm1, %v2477_v13  ;;  %v780_v25 = vpop.f32.mrb[5].mxu0 }
 0x1b6   : > { %2068 = vmatpush3.msra.mxu0 %v780_v25 }
 0x1b7   : > { %2065 = vmatmul.mubr.msk.f32.vlgmr.msra.gmra.mrb[8].mxu1 %vm497_vm0, %v2030_v22  ;;  %2077 = vmatprep.subr.mxu0 %v2477_v13 }
 0x1b8   : > { %2074 = vmatprep.mubr.msk.f32.mxu1 %vm2478_vm1, %v2477_v13  ;;  %2073 = vmatpush3.msra.mxu1 %v2043_v24  ;;  %v2902_v26 = vpop.f32.mrb[6].mxu0 }
 0x1b9   : > { %2082 = vmatprep.subr.mxu1 %v2477_v13  ;;  %v2904_v27 = vpop.f32.mrb[7].mxu0 }
 0x282   : > { %v874_v30 = vpop.f32.mrb[4].mxu1 }
 0x283   : > { %v875_v31 = vadd.f32 %v874_v30, %v801_v29  ;;  %v2051_v32 = vpop.f32.mrb[5].mxu1 }
 0x285   : > { %v1106_v33 = vsel %vm497_vm0, %v875_v31, -inf }
 0x286   : > { %1107 = vmax.xlane.f32.xlu0 %v1106_v33  ;;  %v950_v34 = vpop.f32.mrb[6].mxu1  ;;  %v1026_v35 = vpop.f32.mrb[8].mxu0 }
 0x287   : > { %v951_v36 = vadd.f32 %v950_v34, %v801_v29  ;;  %v1027_v37 = vadd.f32 %v1026_v35, %v801_v29  ;;  %v2056_v38 = vpop.f32.mrb[7].mxu1  ;;  %v2061_v39 = vpop.f32.mrb[9].mxu0 }
 0x288   : > { %v1976_v39 = vld [vmem:[%s3067_s8] ss:$0 sm:$0xff] }
 0x289   : > { %v1109_v40 = vsel %vm497_vm0, %v951_v36, -inf  ;;  %v1112_v41 = vsel %vm497_vm0, %v1027_v37, -inf }
 0x28a   : > { %1110 = vmax.xlane.f32.xlu0 %v1109_v40  ;;  %v1102_v42 = vpop.f32.mrb[8].mxu1  ;;  %1113 = vmax.xlane.f32.xlu1 %v1112_v41 }
 0x28b   : > { %v1103_v43 = vadd.f32 %v1102_v42, %v801_v29  ;;  %v2066_v44 = vpop.f32.mrb[9].mxu1 }
 0x28d   : > { %v1115_v45 = vsel %vm497_vm0, %v1103_v43, -inf }
 0x28e   : > { %1116 = vmax.xlane.f32.xlu1 %v1115_v45 }
 0x313   : > { %v1108_v46 = vpop.xlane.xlu0 %1107 }
 0x314   : > { %v1118_v47 = vsub.f32 %v875_v31, %v1108_v46 }
 0x316   : > { %v1122_v48 = vmul.f32 1.442695, %v1118_v47 }
 0x317   : > { %v1111_v49 = vpop.xlane.xlu0 %1110  ;;  %v1114_v50 = vpop.xlane.xlu1 %1113 }
 0x318   : > { %2193 = vpow2.f32 %v1122_v48  ;;  %v1119_v51 = vsub.f32 %v951_v36, %v1111_v49  ;;  %v1120_v52 = vsub.f32 %v1027_v37, %v1114_v50 }
 0x31a   : > { %v1124_v53 = vmul.f32 1.442695, %v1119_v51  ;;  %v1126_v54 = vmul.f32 1.442695, %v1120_v52 }
 0x31b   : > { %v1117_v55 = vpop.xlane.xlu1 %1116 }
 0x31c   : > { %2195 = vpow2.f32 %v1124_v53  ;;  %v1121_v56 = vsub.f32 %v1103_v43, %v1117_v55 }
 0x31d   : > { %2197 = vpow2.f32 %v1126_v54 }
 0x31e   : > { %v1128_v57 = vmul.f32 1.442695, %v1121_v56 }
 0x320   : > { %2199 = vpow2.f32 %v1128_v57 }
 0x322   : > { %v2194_v58 = vpop.eup %2193 }
 0x323   : > { %v1130_v59 = vsel %vm497_vm0, %v2194_v58, 0.0 }
 0x324   : > { %1131 = vadd.xlane.f32.xlu0 %v1130_v59 }
 0x326   : > { %v2196_v60 = vpop.eup %2195 }
 0x327   : > { %v2198_v61 = vpop.eup %2197  ;;  %v1133_v62 = vsel %vm497_vm0, %v2196_v60, 0.0 }
 0x328   : > { %1134 = vadd.xlane.f32.xlu1 %v1133_v62  ;;  %v1136_v63 = vsel %vm497_vm0, %v2198_v61, 0.0 }
 0x329   : > { %1137 = vadd.xlane.f32.xlu0 %v1136_v63 }
 0x32a   : > { %v2200_v0 = vpop.eup %2199 }
 0x32b   : > { %v1139_v1 = vsel %vm497_vm0, %v2200_v0, 0.0 }
 0x32c   : > { %1140 = vadd.xlane.f32.xlu1 %v1139_v1 }
 0x3b1   : > { %v1132_v2 = vpop.xlane.xlu0 %1131 }
 0x3b2   : > { %2201 = vrcp.f32 %v1132_v2 }
 0x3b5   : > { %v1135_v3 = vpop.xlane.xlu1 %1134 }
 0x3b6   : > { %v1138_v4 = vpop.xlane.xlu0 %1137  ;;  %2203 = vrcp.f32 %v1135_v3 }
 0x3b7   : > { %2205 = vrcp.f32 %v1138_v4 }
 0x3b9   : > { %v1141_v5 = vpop.xlane.xlu1 %1140 }
 0x3ba   : > { %2207 = vrcp.f32 %v1141_v5 }
 0x3bc   : > { %v2202_v6 = vpop.eup %2201 }
 0x3bd   : > { %v1146_v7 = vmul.f32 %v2202_v6, %v2194_v58 }
 0x3bf   : > { %2070 = vmatmul.mubr.msk.f32.vlgmr.msra.gmra.mrb[10].mxu0 %vm497_vm0, %v1146_v7 }
 0x3c0   : > { %v2204_v8 = vpop.eup %2203  ;;  %2078 = vmatpush3.msra.mxu0 %v2904_v27  ;;  %2079 = vmatprep.mubr.msk.f32.mxu0 %vm2478_vm1, %v2477_v13 }
 0x3c1   : > { %v2206_v9 = vpop.eup %2205  ;;  %v1147_v10 = vmul.f32 %v2204_v8, %v2196_v60  ;;  %2087 = vmatprep.subr.mxu0 %v2477_v13 }
 0x3c2   : > { %v1148_v11 = vmul.f32 %v2206_v9, %v2198_v61 }
 0x3c3   : > { %2075 = vmatmul.mubr.msk.f32.vlgmr.msra.gmra.mrb[10].mxu1 %vm497_vm0, %v1147_v10 }
 0x3c4   : > { %v2208_v12 = vpop.eup %2207  ;;  %2080 = vmatmul.mubr.msk.f32.vlgmr.msra.gmra.mrb[12].mxu0 %vm497_vm0, %v1148_v11  ;;  %2083 = vmatpush3.msra.mxu1 %v2902_v26 }
 0x3c5   : > { %v1149_v14 = vmul.f32 %v2208_v12, %v2200_v0  ;;  %2084 = vmatprep.mubr.msk.f32.mxu1 %vm2478_vm1, %v2477_v13  ;;  %2089 = vmatprep.mubr.msk.f32.mxu0 %vm2478_vm1, %v2477_v13 }
 0x3c6   : > { %2092 = vmatprep.subr.mxu1 %v2477_v13  ;;  %2088 = vmatpush3.msra.mxu0 %v1442_v15 }
 0x3c7   : > { %2085 = vmatmul.mubr.msk.f32.vlgmr.msra.gmra.mrb[12].mxu1 %vm497_vm0, %v1149_v14  ;;  %2097 = vmatprep.subr.mxu0 %v2477_v13 }
 0x3c8   : > { %2094 = vmatprep.mubr.msk.f32.mxu1 %vm2478_vm1, %v2477_v13  ;;  %2093 = vmatpush3.msra.mxu1 %v1443_v16 }
 0x3c9   : > { %2102 = vmatprep.subr.mxu1 %v2477_v13 }
 0x492   : > { %v1219_v18 = vpop.f32.mrb[10].mxu0 }
 0x493   : > { %v2071_v19 = vpop.f32.mrb[11].mxu0  ;;  %2090 = vmatmul.mubr.msk.f32.vlgmr.msra.gmra.mrb[14].mxu0 %vm497_vm0, %v1219_v18 }
 0x494   : > { %2098 = vmatpush3.msra.mxu0 %v1444_v17  ;;  %2099 = vmatprep.mubr.msk.f32.mxu0 %vm2478_vm1, %v2477_v13 }
 0x496   : > { %v1292_v21 = vpop.f32.mrb[10].mxu1 }
 0x497   : > { %v1365_v22 = vpop.f32.mrb[12].mxu0  ;;  %v2076_v23 = vpop.f32.mrb[11].mxu1  ;;  %2095 = vmatmul.mubr.msk.f32.vlgmr.msra.gmra.mrb[14].mxu1 %vm497_vm0, %v1292_v21 }
 0x498   : > { %v2081_v24 = vpop.f32.mrb[13].mxu0  ;;  %2100 = vmatmul.mubr.msk.f32.vlgmr.msra.gmra.mrb[16].mxu0 %vm497_vm0, %v1365_v22  ;;  %2103 = vmatpush3.msra.mxu1 %v1445_v20 }
 0x499   : > { %2104 = vmatprep.mubr.msk.f32.mxu1 %vm2478_vm1, %v2477_v13 }
 0x49a   : > { %v1438_v25 = vpop.f32.mrb[12].mxu1 }
 0x49b   : > { %v2086_v26 = vpop.f32.mrb[13].mxu1  ;;  %2105 = vmatmul.mubr.msk.f32.vlgmr.msra.gmra.mrb[16].mxu1 %vm497_vm0, %v1438_v25 }
 0x566   : > { %v1515_v27 = vpop.f32.mrb[14].mxu0 }
 0x567   : > { %v2091_v28 = vpop.f32.mrb[15].mxu0  ;;  %v1739_v30 = vsel %vm1738_vm3, %v1515_v27, 0.0 }
 0x56a   : > { %v1588_v29 = vpop.f32.mrb[14].mxu1 }
 0x56b   : > { %v1740_v31 = vsel %vm1738_vm3, %v1588_v29, 0.0  ;;  %v1661_v32 = vpop.f32.mrb[16].mxu0  ;;  %v2096_v33 = vpop.f32.mrb[15].mxu1 }
 0x56c   : > { %v1741_v34 = vadd.f32 %v1740_v31, %v1739_v30  ;;  %v2101_v35 = vpop.f32.mrb[17].mxu0  ;;  %v1742_v13 = vsel %vm1738_vm3, %v1661_v32, 0.0 }
 0x56e   : > { %v1743_v36 = vadd.f32 %v1742_v13, %v1741_v34  ;;  %v1734_v37 = vpop.f32.mrb[16].mxu1 }
 0x56f   : > { %v1744_v38 = vsel %vm1738_vm3, %v1734_v37, 0.0  ;;  %v2106_v40 = vpop.f32.mrb[17].mxu1 }
 0x570   : > { %v1745_v41 = vadd.f32 %v1744_v38, %v1743_v36 }
 0x572   : > { %v1753_v42 = vadd.f32 %v1976_v39, %v1745_v41 }
 0x574   : > { %1754 = vst.msk [vmem:[%s491_s11] sm:$0xff] %vm1738_vm3, %v1753_v42 }
 0x575   : > { %2398 = shalt.err (!%p2395_p8)
}
 0x576   : > { %s2399_s15 = scalar_lea.hbm %s2955_s27, 128  ;;  %s2403_s20 = scalar_lea.hbm %s3068_s21, 256 }
 0x577   : > { %p2400_p3 = scmp.ne.s32.totalorder %s2955_s27, %s2399_s15  ;;  %p2404_p11 = scmp.lt.u32.totalorder %s2955_s27, %s3068_s21 }
 0x578   : > { %p2405_p7 = scmp.lt.u32.totalorder %s2403_s20, %s2399_s15  ;;  %p2407_p2 = scmp.lt.u32.totalorder %s2399_s15, %s2955_s27 }
 0x579   : > { %p2401_p12 = pnand %p2400_p3, %p3069_p4 }
 0x57a   : > { %p2406_p9 = por %p2405_p7, %p2404_p11 }
 0x57b   : > { %p2402_p10 = pneg %p2401_p12 }
 0x57c   : > { %p2408_p0 = por %p2407_p2, %p2406_p9 }
 0x57e   : > { %p2409_p6 = pnand %p2408_p0, %p2402_p10 }
 0x580   : > { %2412 = shalt.err (!%p2409_p6)
}
 0x581   : > { %2123 = dma.vmem_to_hbm [thread:$0]  (%p3069_p4), %s2957_s30, 128, %s2955_s27, %s1756_s23  }
 0x582 PF: > { %s3070_s25 = sld [smem:[#allocation20_spill]]  ;;  %s3071_s22 = sld [smem:[#allocation25_spill]] }
 0x583   : > { %p3073_p13 = scmp.ge.s32.totalorder %s2467_s12, 2 }
 0x588   : > { %s1781_s19 = sand.u32 1, %s3070_s25   ;;  %p3072_p5 = scmp.ne.s32.totalorder %s3071_s22, 0 }
 0x589   : > { %s1782_s8 = scalar_lea.sflag [#allocation4], %s1781_s19 }
 0x58a   : > { %p2146_p1 = pnand %p3073_p13, %p3072_p5 }
 0x58c   : > { %2450 = dma.done.wait (!%p2146_p1), %s1782_s8, 128  }
 0x58d   : > { %2452 = vsyncadd (!%p2146_p1), %s1782_s8, 4294967168  ;;  %s3074_s12 = sld [smem:[#allocation22_spill]]  ;;  %s3075_s17 = sld [smem:[#allocation21_spill]] }
 0x58e   : > { %s3076_s11 = sld [smem:[#allocation23_spill]]  ;;  %s3077_s30 = smov %s2459_s10 }
 0x593   : > { %p29_p8 = scmp.ge.s32.totalorder %s3074_s12, 4   ;;  %s3078_s10 = smov %s3075_s17 }
 0x595   :  { %31 = sbr.rel (!%p29_p8) target bundleno = 15 (0xf), region = 146 }
 0x59c   :  { %1787 = vsyncpa [#allocation3], 1 }
 0x59d   :  { %1789 = vsyncpa [#allocation3 + $0x1], 1 }
 0x59e   :  { %1790 = vsyncpa [#allocation6], 1 }
 0x59f   :  { %1792 = vsyncpa [#allocation6 + $0x1], 1 }
 0x5a0   :  { %1793 = vsyncpa [#allocation9], 1 }
 0x5a1   :  { %1795 = vsyncpa [#allocation9 + $0x1], 1 }
 0x5a2   :  { %1796 = vsyncpa [#allocation12], 1 }
 0x5a3   :  { %1797 = vsyncpa [#allocation4], 1 }
 0x5a4   :  { %1799 = vsyncpa [#allocation4 + $0x1], 1 }

</bundles_post_ra>
